<compile_context>
chip_gen: v7x
topology: tpu7x:2x2x1
jax: 0.10.0
libtpu: 0.0.40
codegen_flags: <defaults>
</compile_context>

<pallas_src>
import functools

import jax
import jax.numpy as jnp
from jax.experimental import pallas as pl
from jax.experimental.pallas import tpu as pltpu


def _round_up(n, m):
    return ((n + m - 1) // m) * m


def _mlp_kernel(x_ref, w1_ref, b1_ref, w2_ref, b2_ref, w3_ref, b3_ref, o_ref):
    x = x_ref[...]                                                      # (block_b, D) f32

    h1 = jnp.dot(x, w1_ref[...], preferred_element_type=jnp.float32)   # (block_b, H1)
    h1 = jnp.maximum(h1 + b1_ref[...], 0.0)

    h2 = jnp.dot(h1, w2_ref[...], preferred_element_type=jnp.float32)  # (block_b, H2)
    h2 = jnp.maximum(h2 + b2_ref[...], 0.0)

    # Final projection: w3 is pre-padded to (H2, 128) with only column 0 nonzero, so this is
    # a plain MXU matmul (the MXU computes 128 lanes regardless); keep lane 0 and write the
    # (block_b, 1) column directly. Masked column stores (~block_b/8 vst.msk) are cheaper
    # here than a cross-lane shuffle of the whole block.
    y = jnp.dot(h2, w3_ref[...], preferred_element_type=jnp.float32)   # (block_b, 128)
    o_ref[...] = y[:, 0:1] + b3_ref[0, 0]


@functools.partial(jax.jit, static_argnames=("block_b",))
def mlp_forward(x, w1, b1, w2, b2, w3, b3, *, block_b=None):
    B, D = x.shape
    H1 = w1.shape[1]   # 64
    H2 = w2.shape[1]   # 32
    assert w3.shape == (H2, 1)

    # Batch tile: multiple of 128. Default is large (amortizes per-step grid overhead) but
    # capped so num_blocks >= 2 whenever the batch allows (v7x megacore), and chosen to
    # divide B where possible so the pad copy never materializes.
    if block_b is None:
        block_b = min(4096, _round_up(B, 128))
        if B > 128:
            block_b = min(block_b, _round_up((B + 1) // 2, 128))
    block_b = _round_up(block_b, 128)
    B_pad = _round_up(B, block_b)
    num_blocks = B_pad // block_b

    # x streamed in native f32 (no wrapper-side cast); pad only when needed.
    xs = x if B_pad == B else jnp.pad(x, ((0, B_pad - B), (0, 0)))

    w1f = w1.astype(jnp.float32)
    b1r = b1.reshape(1, H1).astype(jnp.float32)
    w2f = w2.astype(jnp.float32)
    b2r = b2.reshape(1, H2).astype(jnp.float32)
    # Pad w3 to a full lane width so the last matmul has a native (H2, 128) RHS.
    w3p = jnp.zeros((H2, 128), jnp.float32).at[:, 0].set(w3[:, 0].astype(jnp.float32))
    b3r = b3.reshape(1, 1).astype(jnp.float32)

    # Constant block index -> weights/biases stay resident in VMEM across grid steps.
    full = lambda shape: pl.BlockSpec(shape, lambda i: (0,) * len(shape))

    cost = pl.CostEstimate(
        flops=int(2 * B_pad * (D * H1 + H1 * H2 + H2 * 128)),
        transcendentals=0,
        bytes_accessed=int(
            B_pad * D * 4                                            # x (f32, dominant)
            + (D * H1 + H1 + H1 * H2 + H2 + H2 * 128 + 1) * 4        # resident weights/biases
            + B_pad * 4                                              # output column
        ),
    )

    out = pl.pallas_call(
        _mlp_kernel,
        out_shape=jax.ShapeDtypeStruct((B_pad, 1), jnp.float32),
        grid_spec=pltpu.PrefetchScalarGridSpec(
            num_scalar_prefetch=0,
            grid=(num_blocks,),
            in_specs=[
                pl.BlockSpec((block_b, D), lambda i: (i, 0)),        # x: streamed, double-buffered
                full((D, H1)),
                full((1, H1)),
                full((H1, H2)),
                full((1, H2)),
                full((H2, 128)),
                pl.BlockSpec(memory_space=pltpu.MemorySpace.SMEM),   # b3 scalar via SMEM
            ],
            out_specs=pl.BlockSpec((block_b, 1), lambda i: (i, 0)),
        ),
        compiler_params=pltpu.CompilerParams(
            dimension_semantics=("parallel",),        # megacore-shardable batch axis (v7x)
            vmem_limit_bytes=32 * 1024 * 1024,        # headroom above v5e's 16 MiB default
        ),
        cost_estimate=cost,
    )(xs, w1f, b1r, w2f, b2r, w3p, b3r)

    return out[:B]


def init_params(key, input_size):
    """Deterministic init mimicking PyTorch nn.Linear default (U(-1/sqrt(fan_in), ...))."""
    def linear(k, fan_in, fan_out):
        kw, kb = jax.random.split(k)
        bound = 1.0 / jnp.sqrt(fan_in)
        w = jax.random.uniform(kw, (fan_in, fan_out), jnp.float32, -bound, bound)
        b = jax.random.uniform(kb, (1, fan_out), jnp.float32, -bound, bound)
        return w, b

    k1, k2, k3 = jax.random.split(key, 3)
    w1, b1 = linear(k1, input_size, 64)
    w2, b2 = linear(k2, 64, 32)
    w3, b3 = linear(k3, 32, 1)
    return w1, b1, w2, b2, w3, b3


def _reference(x, params):
    """Plain-JAX f32 reference (same semantics as the PyTorch forward)."""
    w1, b1, w2, b2, w3, b3 = params
    hp = jax.lax.Precision.HIGHEST
    h1 = jnp.maximum(jnp.dot(x, w1, precision=hp) + b1.reshape(1, -1), 0.0)
    h2 = jnp.maximum(jnp.dot(h1, w2, precision=hp) + b2.reshape(1, -1), 0.0)
    return jnp.dot(h2, w3, precision=hp) + b3.reshape(1, -1)


if __name__ == "__main__":
    key = jax.random.PRNGKey(0)
    k_x1, k_x2, k_x3, k_p = jax.random.split(key, 4)

    input_size = 32
    params = init_params(k_p, input_size)

    # Small batch: exercises the padding path (8 rows -> one 128-row tile).
    x_small = jax.random.normal(k_x1, (8, input_size), jnp.float32)
    out_small = jax.block_until_ready(mlp_forward(x_small, *params))
    assert out_small.shape == (8, 1)
    ref_small = _reference(x_small, params)
    assert jnp.allclose(out_small, ref_small, atol=5e-2, rtol=5e-2), (
        "max err=%e" % float(jnp.max(jnp.abs(out_small - ref_small))))

    # Multi-block batch: no pad, 2 grid blocks (both v7x TensorCores active).
    x_mid = jax.random.normal(k_x2, (512, input_size), jnp.float32)
    out_mid = jax.block_until_ready(mlp_forward(x_mid, *params))
    assert out_mid.shape == (512, 1)
    ref_mid = _reference(x_mid, params)
    assert jnp.allclose(out_mid, ref_mid, atol=5e-2, rtol=5e-2), (
        "max err=%e" % float(jnp.max(jnp.abs(out_mid - ref_mid))))

    # Larger tile path: block_b = 1024, 2 blocks, no pad.
    x_big = jax.random.normal(k_x3, (2048, input_size), jnp.float32)
    out_big = jax.block_until_ready(mlp_forward(x_big, *params))
    assert out_big.shape == (2048, 1)
    ref_big = _reference(x_big, params)
    assert jnp.allclose(out_big, ref_big, atol=5e-2, rtol=5e-2), (
        "max err=%e" % float(jnp.max(jnp.abs(out_big - ref_big))))

    print("KERNEL_OK")
</pallas_src>

<mosaic_0001>
module attributes {stable_mosaic.version = 11 : i64} {
  func.func @_mlp_kernel(%arg0: i32, %arg1: memref<128x32xf32, #tpu.memory_space<vmem>>, %arg2: memref<32x64xf32, #tpu.memory_space<vmem>>, %arg3: memref<1x64xf32, #tpu.memory_space<vmem>>, %arg4: memref<64x32xf32, #tpu.memory_space<vmem>>, %arg5: memref<1x32xf32, #tpu.memory_space<vmem>>, %arg6: memref<32x128xf32, #tpu.memory_space<vmem>>, %arg7: memref<1x1xf32, #tpu.memory_space<smem>>, %arg8: memref<128x1xf32, #tpu.memory_space<vmem>>) attributes {dimension_semantics = [#tpu.dimension_semantics<parallel>], iteration_bounds = array<i64: 1>, scalar_prefetch = 0 : i64, scratch_operands = 0 : i64, tpu.core_type = #tpu.core_type<tc>, window_params = [{transform_indices = @transform_0, window_bounds = array<i64: 128, 32>}, {pipeline_mode = #tpu.pipeline_mode<synchronous>, transform_indices = @transform_1, window_bounds = array<i64: 32, 64>}, {pipeline_mode = #tpu.pipeline_mode<synchronous>, transform_indices = @transform_2, window_bounds = array<i64: 1, 64>}, {pipeline_mode = #tpu.pipeline_mode<synchronous>, transform_indices = @transform_3, window_bounds = array<i64: 64, 32>}, {pipeline_mode = #tpu.pipeline_mode<synchronous>, transform_indices = @transform_4, window_bounds = array<i64: 1, 32>}, {pipeline_mode = #tpu.pipeline_mode<synchronous>, transform_indices = @transform_5, window_bounds = array<i64: 32, 128>}, {transform_indices = @transform_6, window_bounds = array<i64: 1, 1>}, {transform_indices = @transform_7, window_bounds = array<i64: 128, 1>}]} {
    %c0 = arith.constant 0 : index
    %c0_0 = arith.constant 0 : index
    %0 = vector.load %arg1[%c0, %c0_0] : memref<128x32xf32, #tpu.memory_space<vmem>>, vector<128x32xf32>
    %c0_1 = arith.constant 0 : index
    %c0_2 = arith.constant 0 : index
    %1 = vector.load %arg2[%c0_1, %c0_2] : memref<32x64xf32, #tpu.memory_space<vmem>>, vector<32x64xf32>
    %cst = arith.constant dense<0.000000e+00> : vector<128x64xf32>
    %2 = tpu.matmul %0, %1, %cst {dimension_numbers = #tpu.dot_dimension_numbers<[1], [0], [0], [1], [0, 0, 1, 1], [], []>} : vector<128x32xf32>, vector<32x64xf32>, vector<128x64xf32> -> vector<128x64xf32>
    %c0_3 = arith.constant 0 : index
    %c0_4 = arith.constant 0 : index
    %3 = vector.load %arg3[%c0_3, %c0_4] : memref<1x64xf32, #tpu.memory_space<vmem>>, vector<1x64xf32>
    %4 = vector.broadcast %3 : vector<1x64xf32> to vector<128x64xf32>
    %5 = arith.addf %2, %4 : vector<128x64xf32>
    %cst_5 = arith.constant 0.000000e+00 : f32
    %6 = vector.broadcast %cst_5 : f32 to vector<128x64xf32>
    %7 = arith.maximumf %5, %6 : vector<128x64xf32>
    %c0_6 = arith.constant 0 : index
    %c0_7 = arith.constant 0 : index
    %8 = vector.load %arg4[%c0_6, %c0_7] : memref<64x32xf32, #tpu.memory_space<vmem>>, vector<64x32xf32>
    %cst_8 = arith.constant dense<0.000000e+00> : vector<128x32xf32>
    %9 = tpu.matmul %7, %8, %cst_8 {dimension_numbers = #tpu.dot_dimension_numbers<[1], [0], [0], [1], [0, 0, 1, 1], [], []>} : vector<128x64xf32>, vector<64x32xf32>, vector<128x32xf32> -> vector<128x32xf32>
    %c0_9 = arith.constant 0 : index
    %c0_10 = arith.constant 0 : index
    %10 = vector.load %arg5[%c0_9, %c0_10] : memref<1x32xf32, #tpu.memory_space<vmem>>, vector<1x32xf32>
    %11 = vector.broadcast %10 : vector<1x32xf32> to vector<128x32xf32>
    %12 = arith.addf %9, %11 : vector<128x32xf32>
    %cst_11 = arith.constant 0.000000e+00 : f32
    %13 = vector.broadcast %cst_11 : f32 to vector<128x32xf32>
    %14 = arith.maximumf %12, %13 : vector<128x32xf32>
    %c0_12 = arith.constant 0 : index
    %c0_13 = arith.constant 0 : index
    %15 = vector.load %arg6[%c0_12, %c0_13] : memref<32x128xf32, #tpu.memory_space<vmem>>, vector<32x128xf32>
    %cst_14 = arith.constant dense<0.000000e+00> : vector<128x128xf32>
    %16 = tpu.matmul %14, %15, %cst_14 {dimension_numbers = #tpu.dot_dimension_numbers<[1], [0], [0], [1], [0, 0, 1, 1], [], []>} : vector<128x32xf32>, vector<32x128xf32>, vector<128x128xf32> -> vector<128x128xf32>
    %17 = vector.extract_strided_slice %16 {offsets = [0, 0], sizes = [128, 1], strides = [1, 1]} : vector<128x128xf32> to vector<128x1xf32>
    %c0_15 = arith.constant 0 : index
    %c0_16 = arith.constant 0 : index
    %18 = memref.load %arg7[%c0_15, %c0_16] : memref<1x1xf32, #tpu.memory_space<smem>>
    %19 = vector.broadcast %18 : f32 to vector<128x1xf32>
    %20 = arith.addf %17, %19 : vector<128x1xf32>
    %c0_17 = arith.constant 0 : index
    %c0_18 = arith.constant 0 : index
    %21 = vector.load %arg8[%c0_17, %c0_18] : memref<128x1xf32, #tpu.memory_space<vmem>>, vector<128x1xf32>
    tpu.vector_store %arg8[%c0_17, %c0_18], %20 {strides = array<i32>} : memref<128x1xf32, #tpu.memory_space<vmem>>, vector<128x1xf32>,
    return
  }
  func.func @transform_0(%arg0: i32) -> (i32, i32) {
    %c0_i32 = arith.constant 0 : i32
    %c0_i32_0 = arith.constant 0 : i32
    return %arg0, %c0_i32 : i32, i32
  }
  func.func @transform_1(%arg0: i32) -> (i32, i32) {
    %c0_i32 = arith.constant 0 : i32
    %c0_i32_0 = arith.constant 0 : i32
    %c0_i32_1 = arith.constant 0 : i32
    return %c0_i32, %c0_i32_0 : i32, i32
  }
  func.func @transform_2(%arg0: i32) -> (i32, i32) {
    %c0_i32 = arith.constant 0 : i32
    %c0_i32_0 = arith.constant 0 : i32
    %c0_i32_1 = arith.constant 0 : i32
    return %c0_i32, %c0_i32_0 : i32, i32
  }
  func.func @transform_3(%arg0: i32) -> (i32, i32) {
    %c0_i32 = arith.constant 0 : i32
    %c0_i32_0 = arith.constant 0 : i32
    %c0_i32_1 = arith.constant 0 : i32
    return %c0_i32, %c0_i32_0 : i32, i32
  }
  func.func @transform_4(%arg0: i32) -> (i32, i32) {
    %c0_i32 = arith.constant 0 : i32
    %c0_i32_0 = arith.constant 0 : i32
    %c0_i32_1 = arith.constant 0 : i32
    return %c0_i32, %c0_i32_0 : i32, i32
  }
  func.func @transform_5(%arg0: i32) -> (i32, i32) {
    %c0_i32 = arith.constant 0 : i32
    %c0_i32_0 = arith.constant 0 : i32
    %c0_i32_1 = arith.constant 0 : i32
    return %c0_i32, %c0_i32_0 : i32, i32
  }
  func.func @transform_6(%arg0: i32) -> (i32, i32) {
    %c0_i32 = arith.constant 0 : i32
    %c0_i32_0 = arith.constant 0 : i32
    %c0_i32_1 = arith.constant 0 : i32
    return %c0_i32, %c0_i32_0 : i32, i32
  }
  func.func @transform_7(%arg0: i32) -> (i32, i32) {
    %c0_i32 = arith.constant 0 : i32
    %c0_i32_0 = arith.constant 0 : i32
    return %arg0, %c0_i32 : i32, i32
  }
}

</mosaic_0001>

<bundles_post_ra>
// kernel: mlp_forward.1
= control target key start
LH: loop header
LB: loop body
LE: loop exit
PB: predicated region body
PF: predicated region fallthrough
CT: control target
= control target key end

     0   :  { %vm54_vm0 = vcmask 261120   ;;  %vm279_vm1 = vcmask 523264   ;;  %vm704_vm2 = vcmask 7168   ;;  %s1236_s1 = inlined_call_operand.vmem [shape: f32[32,64], index: 1, kind: input, shape index: {}]   ;;  %s1237_s0 = inlined_call_operand.vmem [shape: f32[128,32], index: 0, kind: input, shape index: {}]   ;;  %s1238_s3 = inlined_call_operand.vmem [shape: f32[64,32], index: 3, kind: input, shape index: {}]   ;;  %s1239_s5 = inlined_call_operand.vmem [shape: f32[32,128], index: 5, kind: input, shape index: {}]   ;;  %s1240_s2 = inlined_call_operand.vmem [shape: f32[1,64], index: 2, kind: input, shape index: {}]   ;;  %s1241_s4 = inlined_call_operand.vmem [shape: f32[1,32], index: 4, kind: input, shape index: {}]   ;;  %s1242_s6 = inlined_call_operand.<no memory space> [shape: f32[1,1], index: 6, kind: input, shape index: {}]   ;;  %s1243_s7 = inlined_call_operand.vmem [shape: f32[128,1], index: 7, kind: output, shape index: {}]  }
   0x1   :  { %v43_v0 = vld [vmem:[%s1236_s1] sm:$0xff]  ;;  %v44_v1 = vld [vmem:[%s1236_s1 + $0x8] sm:$0xff]  ;;  %v45_v2 = vld [vmem:[%s1236_s1 + $0x10] sm:$0xff] }
   0x2   :  { %v943_v3 = vpack.c.bf16 %v44_v1, %v43_v0  ;;  %v46_v4 = vld [vmem:[%s1236_s1 + $0x18] sm:$0xff]  ;;  %v27_v5 = vld [vmem:[%s1237_s0] sm:$0xff]  ;;  %v265_v9 = vld [vmem:[%s1238_s3 + $0x8] sm:$0xff] }
   0x3   :  { %v947_v6 = vpack.c.bf16 %v46_v4, %v45_v2  ;;  %847 = vmatprep.mubr.msk.f32.mxu0 %vm54_vm0, %v27_v5  ;;  %v35_v7 = vld [vmem:[%s1237_s0 + $0x40] sm:$0xff]  ;;  %v266_v10 = vld [vmem:[%s1238_s3 + $0x10] sm:$0xff]  ;;  %v267_v11 = vld [vmem:[%s1238_s3 + $0x18] sm:$0xff] }
   0x4   :  { %944 = vmatprep.subr.bf16.mxu0 %v943_v3  ;;  %975 = vmatprep.subr.bf16.mxu1 %v943_v3  ;;  %v264_v8 = vld [vmem:[%s1238_s3] sm:$0xff]  ;;  %v28_v12 = vld [vmem:[%s1237_s0 + $0x8] sm:$0xff]  ;;  %v29_v15 = vld [vmem:[%s1237_s0 + $0x10] sm:$0xff]  ;;  %v955_v17 = vpack.c.bf16 %v267_v11, %v266_v10 }
   0x5   :  { %946 = vmatpush3.bf16.msra.mxu0 %v943_v3  ;;  %977 = vmatpush3.bf16.msra.mxu1 %v943_v3  ;;  %v36_v13 = vld [vmem:[%s1237_s0 + $0x48] sm:$0xff]  ;;  %v951_v14 = vpack.c.bf16 %v265_v9, %v264_v8  ;;  %v37_v16 = vld [vmem:[%s1237_s0 + $0x50] sm:$0xff]  ;;  %v268_v18 = vld [vmem:[%s1238_s3 + $0x20] sm:$0xff] }
   0x6   :  { %948 = vmatprep.subr.bf16.mxu0 %v947_v6  ;;  %976 = vmatprep.subr.bf16.mxu1 %v947_v6  ;;  %v269_v19 = vld [vmem:[%s1238_s3 + $0x28] sm:$0xff]  ;;  %v30_v20 = vld [vmem:[%s1237_s0 + $0x18] sm:$0xff]  ;;  %v31_v22 = vld [vmem:[%s1237_s0 + $0x20] sm:$0xff] }
   0x7   :  { %859 = vmatprep.mubr.msk.f32.mxu1 %vm54_vm0, %v35_v7  ;;  %v38_v21 = vld [vmem:[%s1237_s0 + $0x58] sm:$0xff]  ;;  %v39_v23 = vld [vmem:[%s1237_s0 + $0x60] sm:$0xff]  ;;  %v959_v24 = vpack.c.bf16 %v269_v19, %v268_v18  ;;  %v32_v25 = vld [vmem:[%s1237_s0 + $0x28] sm:$0xff] }
   0x8   :  { %v40_v26 = vld [vmem:[%s1237_s0 + $0x68] sm:$0xff]  ;;  %v33_v27 = vld [vmem:[%s1237_s0 + $0x30] sm:$0xff]  ;;  %v34_v29 = vld [vmem:[%s1237_s0 + $0x38] sm:$0xff] }
   0x9   :  { %950 = vmatpush3.bf16.msra.mxu0 %v947_v6  ;;  %978 = vmatpush3.bf16.msra.mxu1 %v947_v6  ;;  %v41_v28 = vld [vmem:[%s1237_s0 + $0x70] sm:$0xff]  ;;  %v42_v30 = vld [vmem:[%s1237_s0 + $0x78] sm:$0xff]  ;;  %v489_v34 = vld [vmem:[%s1239_s5] sm:$0xff] }
   0xa   :  { %952 = vmatprep.subr.bf16.mxu1 %v951_v14  ;;  %v270_v31 = vld [vmem:[%s1238_s3 + $0x30] sm:$0xff]  ;;  %v271_v32 = vld [vmem:[%s1238_s3 + $0x38] sm:$0xff]  ;;  %v490_v35 = vld [vmem:[%s1239_s5 + $0x8] sm:$0xff] }
   0xb   :  { %v963_v33 = vpack.c.bf16 %v271_v32, %v270_v31  ;;  %v491_v36 = vld [vmem:[%s1239_s5 + $0x10] sm:$0xff]  ;;  %v967_v37 = vpack.c.bf16 %v490_v35, %v489_v34  ;;  %v492_v38 = vld [vmem:[%s1239_s5 + $0x18] sm:$0xff]  ;;  %v725_v40 = vld [vmem:[%s1240_s2] ss:$0 sm:$0xff] }
   0xc   :  { %848 = vmatmul.mubr.msk.f32.vlgmr.msra.gmra.mrb[0].mxu0 %vm54_vm0, %v28_v12  ;;  %860 = vmatmul.mubr.msk.f32.vlgmr.msra.gmra.mrb[0].mxu1 %vm54_vm0, %v36_v13  ;;  %v971_v39 = vpack.c.bf16 %v492_v38, %v491_v36 }
   0xd   :  { %850 = vmatprep.mubr.msk.f32.mxu0 %vm54_vm0, %v29_v15  ;;  %862 = vmatprep.mubr.msk.f32.mxu1 %vm54_vm0, %v37_v16 }
   0xe   :  { %954 = vmatpush3.bf16.msra.mxu1 %v951_v14  ;;  %968 = vmatprep.subr.bf16.mxu0 %v967_v37 }
   0xf   :  { %956 = vmatprep.subr.bf16.mxu1 %v955_v17  ;;  %970 = vmatpush3.bf16.msra.mxu0 %v967_v37 }
  0x10   :  { %851 = vmatmul.mubr.msk.f32.gmra.mrb[2].mxu0 %vm54_vm0, %v30_v20  ;;  %863 = vmatmul.mubr.msk.f32.gmra.mrb[2].mxu1 %vm54_vm0, %v38_v21 }
  0x11   :  { %853 = vmatprep.mubr.msk.f32.mxu0 %vm54_vm0, %v31_v22  ;;  %865 = vmatprep.mubr.msk.f32.mxu1 %vm54_vm0, %v39_v23 }
  0x12   :  { %958 = vmatpush3.bf16.msra.mxu1 %v955_v17  ;;  %972 = vmatprep.subr.bf16.mxu0 %v971_v39 }
  0x13   :  { %960 = vmatprep.subr.bf16.mxu1 %v959_v24  ;;  %974 = vmatpush3.bf16.msra.mxu0 %v971_v39 }
  0x14   :  { %854 = vmatmul.mubr.msk.f32.gmra.mrb[4].mxu0 %vm54_vm0, %v32_v25  ;;  %866 = vmatmul.mubr.msk.f32.gmra.mrb[4].mxu1 %vm54_vm0, %v40_v26  ;;  %v742_v25 = vld [vmem:[%s1241_s4] ss:$0 sm:$0xff] }
  0x15   :  { %856 = vmatprep.mubr.msk.f32.mxu0 %vm54_vm0, %v33_v27  ;;  %868 = vmatprep.mubr.msk.f32.mxu1 %vm54_vm0, %v41_v28 }
  0x16   :  { %962 = vmatpush3.bf16.msra.mxu1 %v959_v24 }
  0x17   :  { %964 = vmatprep.subr.bf16.mxu1 %v963_v33 }
  0x18   :  { %857 = vmatmul.mubr.msk.f32.gmra.mrb[6].mxu0 %vm54_vm0, %v34_v29  ;;  %869 = vmatmul.mubr.msk.f32.gmra.mrb[6].mxu1 %vm54_vm0, %v42_v30 }
  0x1a   :  { %966 = vmatpush3.bf16.msra.mxu1 %v963_v33 }
  0xdf   :  { %v849_v41 = vpop.f32.mrb[0].mxu0  ;;  %v861_v42 = vpop.f32.mrb[0].mxu1 }
  0xe0   :  { %v175_v43 = vadd.f32 %v849_v41, %v725_v40  ;;  %v169_v44 = vpop.f32.mrb[1].mxu0  ;;  %v209_v45 = vpop.f32.mrb[1].mxu1  ;;  %v215_v12 = vadd.f32 %v861_v42, %v725_v40 }
  0xe1   :  { %v170_v46 = vadd.f32 %v725_v40, %v169_v44  ;;  %v210_v1 = vadd.f32 %v725_v40, %v209_v45 }
  0xe2   :  { %v249_v50 = vmax.f32 %v175_v43, 0.0  ;;  %v257_v15 = vmax.f32 %v215_v12, 0.0 }
  0xe3   :  { %v248_v47 = vmax.f32 %v170_v46, 0.0  ;;  %v852_v48 = vpop.f32.mrb[2].mxu0  ;;  %v864_v49 = vpop.f32.mrb[2].mxu1  ;;  %v256_v9 = vmax.f32 %v210_v1, 0.0 }
  0xe4   :  { %v185_v51 = vadd.f32 %v852_v48, %v725_v40  ;;  %v179_v52 = vpop.f32.mrb[3].mxu0  ;;  %v219_v53 = vpop.f32.mrb[3].mxu1  ;;  %v225_v16 = vadd.f32 %v864_v49, %v725_v40 }
  0xe5   :  { %v180_v54 = vadd.f32 %v725_v40, %v179_v52  ;;  %887 = vmatprep.mubr.msk.f32.mxu1 %vm279_vm1, %v248_v47  ;;  %v220_v10 = vadd.f32 %v725_v40, %v219_v53 }
  0xe6   :  { %888 = vmatmul.mubr.msk.f32.vlgmr.msra.gmra.mrb[8].mxu1 %vm279_vm1, %v249_v50  ;;  %v251_v58 = vmax.f32 %v185_v51, 0.0  ;;  %v259_v19 = vmax.f32 %v225_v16, 0.0 }
  0xe7   :  { %v250_v55 = vmax.f32 %v180_v54, 0.0  ;;  %v855_v56 = vpop.f32.mrb[4].mxu0  ;;  %v867_v57 = vpop.f32.mrb[4].mxu1  ;;  %v258_v13 = vmax.f32 %v220_v10, 0.0  ;;  %v687_v10 = vstv %s1242_s6 }
  0xe8   :  { %v195_v59 = vadd.f32 %v855_v56, %v725_v40  ;;  %v189_v60 = vpop.f32.mrb[5].mxu0  ;;  %v229_v61 = vpop.f32.mrb[5].mxu1  ;;  %v235_v20 = vadd.f32 %v867_v57, %v725_v40 }
  0xe9   :  { %v190_v62 = vadd.f32 %v725_v40, %v189_v60  ;;  %890 = vmatprep.mubr.msk.f32.mxu1 %vm279_vm1, %v250_v55  ;;  %v230_v14 = vadd.f32 %v725_v40, %v229_v61 }
  0xea   :  { %891 = vmatmul.mubr.msk.f32.gmra.mrb[10].mxu1 %vm279_vm1, %v251_v58  ;;  %v253_v3 = vmax.f32 %v195_v59, 0.0  ;;  %v261_v22 = vmax.f32 %v235_v20, 0.0 }
  0xeb   :  { %v252_v63 = vmax.f32 %v190_v62, 0.0  ;;  %v858_v0 = vpop.f32.mrb[6].mxu0  ;;  %v870_v2 = vpop.f32.mrb[6].mxu1  ;;  %v260_v17 = vmax.f32 %v230_v14, 0.0 }
  0xec   :  { %v205_v4 = vadd.f32 %v858_v0, %v725_v40  ;;  %v199_v5 = vpop.f32.mrb[7].mxu0  ;;  %v239_v6 = vpop.f32.mrb[7].mxu1  ;;  %v245_v23 = vadd.f32 %v870_v2, %v725_v40 }
  0xed   :  { %v200_v7 = vadd.f32 %v725_v40, %v199_v5  ;;  %893 = vmatprep.mubr.msk.f32.mxu1 %vm279_vm1, %v252_v63  ;;  %v240_v18 = vadd.f32 %v725_v40, %v239_v6 }
  0xee   :  { %894 = vmatmul.mubr.msk.f32.gmra.mrb[12].mxu1 %vm279_vm1, %v253_v3  ;;  %v255_v11 = vmax.f32 %v205_v4, 0.0  ;;  %v263_v24 = vmax.f32 %v245_v23, 0.0 }
  0xef   :  { %v254_v8 = vmax.f32 %v200_v7, 0.0  ;;  %v262_v21 = vmax.f32 %v240_v18, 0.0 }
  0xf1   :  { %896 = vmatprep.mubr.msk.f32.mxu1 %vm279_vm1, %v254_v8 }
  0xf2   :  { %897 = vmatmul.mubr.msk.f32.gmra.mrb[14].mxu1 %vm279_vm1, %v255_v11 }
  0xf3   :  { %899 = vmatprep.mubr.msk.f32.mxu1 %vm279_vm1, %v256_v9 }
  0xf6   :  { %900 = vmatmul.mubr.msk.f32.gmra.mrb[16].mxu1 %vm279_vm1, %v257_v15 }
  0xf7   :  { %902 = vmatprep.mubr.msk.f32.mxu1 %vm279_vm1, %v258_v13 }
  0xfa   :  { %903 = vmatmul.mubr.msk.f32.gmra.mrb[18].mxu1 %vm279_vm1, %v259_v19 }
  0xfb   :  { %905 = vmatprep.mubr.msk.f32.mxu1 %vm279_vm1, %v260_v17 }
  0xfe   :  { %906 = vmatmul.mubr.msk.f32.gmra.mrb[20].mxu1 %vm279_vm1, %v261_v22 }
  0xff   :  { %908 = vmatprep.mubr.msk.f32.mxu1 %vm279_vm1, %v262_v21 }
 0x102   :  { %909 = vmatmul.mubr.msk.f32.gmra.mrb[22].mxu1 %vm279_vm1, %v263_v24 }
 0x1b9   :  { %v889_v26 = vpop.f32.mrb[8].mxu1 }
 0x1ba   :  { %v400_v27 = vadd.f32 %v889_v26, %v742_v25  ;;  %v394_v28 = vpop.f32.mrb[9].mxu1 }
 0x1bb   :  { %v395_v29 = vadd.f32 %v742_v25, %v394_v28 }
 0x1bc   :  { %v474_v32 = vmax.f32 %v400_v27, 0.0 }
 0x1bd   :  { %v473_v30 = vmax.f32 %v395_v29, 0.0  ;;  %v892_v31 = vpop.f32.mrb[10].mxu1 }
 0x1be   :  { %v410_v33 = vadd.f32 %v892_v31, %v742_v25  ;;  %v404_v34 = vpop.f32.mrb[11].mxu1 }
 0x1bf   :  { %v405_v35 = vadd.f32 %v742_v25, %v404_v34  ;;  %919 = vmatprep.mubr.msk.f32.mxu0 %vm54_vm0, %v473_v30 }
 0x1c0   :  { %920 = vmatmul.mubr.msk.f32.vlgmr.msra.gmra.mrb[8].mxu0 %vm54_vm0, %v474_v32  ;;  %v476_v38 = vmax.f32 %v410_v33, 0.0 }
 0x1c1   :  { %v475_v36 = vmax.f32 %v405_v35, 0.0  ;;  %v895_v37 = vpop.f32.mrb[12].mxu1 }
 0x1c2   :  { %v420_v39 = vadd.f32 %v895_v37, %v742_v25  ;;  %v414_v40 = vpop.f32.mrb[13].mxu1 }
 0x1c3   :  { %v415_v41 = vadd.f32 %v742_v25, %v414_v40  ;;  %922 = vmatprep.mubr.msk.f32.mxu0 %vm54_vm0, %v475_v36 }
 0x1c4   :  { %923 = vmatmul.mubr.msk.f32.gmra.mrb[10].mxu0 %vm54_vm0, %v476_v38  ;;  %v478_v44 = vmax.f32 %v420_v39, 0.0 }
 0x1c5   :  { %v477_v42 = vmax.f32 %v415_v41, 0.0  ;;  %v898_v43 = vpop.f32.mrb[14].mxu1 }
 0x1c6   :  { %v430_v45 = vadd.f32 %v898_v43, %v742_v25  ;;  %v424_v46 = vpop.f32.mrb[15].mxu1 }
 0x1c7   :  { %v425_v47 = vadd.f32 %v742_v25, %v424_v46  ;;  %925 = vmatprep.mubr.msk.f32.mxu0 %vm54_vm0, %v477_v42 }
 0x1c8   :  { %926 = vmatmul.mubr.msk.f32.gmra.mrb[12].mxu0 %vm54_vm0, %v478_v44  ;;  %v480_v50 = vmax.f32 %v430_v45, 0.0 }
 0x1c9   :  { %v479_v48 = vmax.f32 %v425_v47, 0.0  ;;  %v901_v49 = vpop.f32.mrb[16].mxu1 }
 0x1ca   :  { %v440_v51 = vadd.f32 %v901_v49, %v742_v25  ;;  %v434_v52 = vpop.f32.mrb[17].mxu1 }
 0x1cb   :  { %v435_v53 = vadd.f32 %v742_v25, %v434_v52  ;;  %928 = vmatprep.mubr.msk.f32.mxu0 %vm54_vm0, %v479_v48 }
 0x1cc   :  { %929 = vmatmul.mubr.msk.f32.gmra.mrb[14].mxu0 %vm54_vm0, %v480_v50  ;;  %v482_v56 = vmax.f32 %v440_v51, 0.0 }
 0x1cd   :  { %v481_v54 = vmax.f32 %v435_v53, 0.0  ;;  %v904_v55 = vpop.f32.mrb[18].mxu1 }
 0x1ce   :  { %v450_v57 = vadd.f32 %v904_v55, %v742_v25  ;;  %v444_v58 = vpop.f32.mrb[19].mxu1 }
 0x1cf   :  { %v445_v59 = vadd.f32 %v742_v25, %v444_v58  ;;  %931 = vmatprep.mubr.msk.f32.mxu0 %vm54_vm0, %v481_v54 }
 0x1d0   :  { %932 = vmatmul.mubr.msk.f32.gmra.mrb[16].mxu0 %vm54_vm0, %v482_v56  ;;  %v484_v62 = vmax.f32 %v450_v57, 0.0 }
 0x1d1   :  { %v483_v60 = vmax.f32 %v445_v59, 0.0  ;;  %v907_v61 = vpop.f32.mrb[20].mxu1 }
 0x1d2   :  { %v460_v63 = vadd.f32 %v907_v61, %v742_v25  ;;  %v454_v0 = vpop.f32.mrb[21].mxu1 }
 0x1d3   :  { %v455_v1 = vadd.f32 %v742_v25, %v454_v0  ;;  %934 = vmatprep.mubr.msk.f32.mxu0 %vm54_vm0, %v483_v60 }
 0x1d4   :  { %935 = vmatmul.mubr.msk.f32.gmra.mrb[18].mxu0 %vm54_vm0, %v484_v62  ;;  %v486_v4 = vmax.f32 %v460_v63, 0.0 }
 0x1d5   :  { %v485_v2 = vmax.f32 %v455_v1, 0.0  ;;  %v910_v3 = vpop.f32.mrb[22].mxu1 }
 0x1d6   :  { %v470_v5 = vadd.f32 %v910_v3, %v742_v25  ;;  %v464_v6 = vpop.f32.mrb[23].mxu1 }
 0x1d7   :  { %v465_v7 = vadd.f32 %v742_v25, %v464_v6  ;;  %937 = vmatprep.mubr.msk.f32.mxu0 %vm54_vm0, %v485_v2 }
 0x1d8   :  { %938 = vmatmul.mubr.msk.f32.gmra.mrb[20].mxu0 %vm54_vm0, %v486_v4  ;;  %v488_v9 = vmax.f32 %v470_v5, 0.0 }
 0x1d9   :  { %v487_v8 = vmax.f32 %v465_v7, 0.0 }
 0x1db   :  { %940 = vmatprep.mubr.msk.f32.mxu0 %vm54_vm0, %v487_v8 }
 0x1dc   :  { %941 = vmatmul.mubr.msk.f32.gmra.mrb[22].mxu0 %vm54_vm0, %v488_v9 }
 0x293   :  { %v921_v11 = vpop.f32.mrb[8].mxu0 }
 0x294   :  { %v689_v12 = vadd.f32 %v921_v11, %v687_v10  ;;  %v607_v13 = vpop.f32.mrb[9].mxu0 }
 0x295   :  { %v688_v14 = vadd.f32 %v687_v10, %v607_v13 }
 0x296   :  { %706 = vst.msk [vmem:[%s1243_s7 + $0x8] sm:$0xff] %vm704_vm2, %v689_v12 }
 0x297   :  { %705 = vst.msk [vmem:[%s1243_s7] sm:$0xff] %vm704_vm2, %v688_v14  ;;  %v924_v15 = vpop.f32.mrb[10].mxu0 }
 0x298   :  { %v691_v16 = vadd.f32 %v924_v15, %v687_v10  ;;  %v617_v17 = vpop.f32.mrb[11].mxu0 }
 0x299   :  { %v690_v18 = vadd.f32 %v687_v10, %v617_v17 }
 0x29a   :  { %708 = vst.msk [vmem:[%s1243_s7 + $0x18] sm:$0xff] %vm704_vm2, %v691_v16 }
 0x29b   :  { %707 = vst.msk [vmem:[%s1243_s7 + $0x10] sm:$0xff] %vm704_vm2, %v690_v18  ;;  %v927_v19 = vpop.f32.mrb[12].mxu0 }
 0x29c   :  { %v693_v20 = vadd.f32 %v927_v19, %v687_v10  ;;  %v627_v21 = vpop.f32.mrb[13].mxu0 }
 0x29d   :  { %v692_v22 = vadd.f32 %v687_v10, %v627_v21 }
 0x29e   :  { %710 = vst.msk [vmem:[%s1243_s7 + $0x28] sm:$0xff] %vm704_vm2, %v693_v20 }
 0x29f   :  { %709 = vst.msk [vmem:[%s1243_s7 + $0x20] sm:$0xff] %vm704_vm2, %v692_v22  ;;  %v930_v23 = vpop.f32.mrb[14].mxu0 }
 0x2a0   :  { %v695_v24 = vadd.f32 %v930_v23, %v687_v10  ;;  %v637_v25 = vpop.f32.mrb[15].mxu0 }
 0x2a1   :  { %v694_v26 = vadd.f32 %v687_v10, %v637_v25 }
 0x2a2   :  { %712 = vst.msk [vmem:[%s1243_s7 + $0x38] sm:$0xff] %vm704_vm2, %v695_v24 }
 0x2a3   :  { %711 = vst.msk [vmem:[%s1243_s7 + $0x30] sm:$0xff] %vm704_vm2, %v694_v26  ;;  %v933_v27 = vpop.f32.mrb[16].mxu0 }
 0x2a4   :  { %v697_v28 = vadd.f32 %v933_v27, %v687_v10  ;;  %v647_v29 = vpop.f32.mrb[17].mxu0 }
 0x2a5   :  { %v696_v30 = vadd.f32 %v687_v10, %v647_v29 }
 0x2a6   :  { %714 = vst.msk [vmem:[%s1243_s7 + $0x48] sm:$0xff] %vm704_vm2, %v697_v28 }
 0x2a7   :  { %713 = vst.msk [vmem:[%s1243_s7 + $0x40] sm:$0xff] %vm704_vm2, %v696_v30  ;;  %v936_v31 = vpop.f32.mrb[18].mxu0 }
 0x2a8   :  { %v699_v32 = vadd.f32 %v936_v31, %v687_v10  ;;  %v657_v33 = vpop.f32.mrb[19].mxu0 }
 0x2a9   :  { %v698_v34 = vadd.f32 %v687_v10, %v657_v33 }
 0x2aa   :  { %716 = vst.msk [vmem:[%s1243_s7 + $0x58] sm:$0xff] %vm704_vm2, %v699_v32 }
 0x2ab   :  { %715 = vst.msk [vmem:[%s1243_s7 + $0x50] sm:$0xff] %vm704_vm2, %v698_v34  ;;  %v939_v35 = vpop.f32.mrb[20].mxu0 }
 0x2ac   :  { %v701_v36 = vadd.f32 %v939_v35, %v687_v10  ;;  %v667_v37 = vpop.f32.mrb[21].mxu0 }
 0x2ad   :  { %v700_v38 = vadd.f32 %v687_v10, %v667_v37 }
 0x2ae   :  { %718 = vst.msk [vmem:[%s1243_s7 + $0x68] sm:$0xff] %vm704_vm2, %v701_v36 }
 0x2af   :  { %717 = vst.msk [vmem:[%s1243_s7 + $0x60] sm:$0xff] %vm704_vm2, %v700_v38  ;;  %v942_v39 = vpop.f32.mrb[22].mxu0 }
 0x2b0   :  { %v703_v40 = vadd.f32 %v942_v39, %v687_v10  ;;  %v677_v41 = vpop.f32.mrb[23].mxu0 }
 0x2b1   :  { %v702_v42 = vadd.f32 %v687_v10, %v677_v41 }
 0x2b2   :  { %720 = vst.msk [vmem:[%s1243_s7 + $0x78] sm:$0xff] %vm704_vm2, %v703_v40 }
 0x2b3   :  { %719 = vst.msk [vmem:[%s1243_s7 + $0x70] sm:$0xff] %vm704_vm2, %v702_v42 }

</bundles_post_ra>
